<compile_context>
chip_gen: v7x
topology: tpu7x:2x2x1
jax: 0.10.0
libtpu: 0.0.40
codegen_flags: <defaults>
</compile_context>

<pallas_src>
import jax
import jax.numpy as jnp
from jax.experimental import pallas as pl
from jax.experimental.pallas import tpu as pltpu


def _attention_kernel(x_ref, w_ref, o_ref, m_sc, l_sc, acc_sc):
    """One grid step: batch block i (axis 0, parallel), seq block k (axis 1, reduction).

    x_ref:  (tb, ts, D) VMEM  lstm-output block
    w_ref:  (1, D)      VMEM  attention linear weight (resident, shared)
    o_ref:  (tb, D)     VMEM  context output block (written on the last seq step)
    m_sc:   (tb, 1)     VMEM  running max of scores        (f32 scratch)
    l_sc:   (tb, 1)     VMEM  running softmax denominator  (f32 scratch)
    acc_sc: (tb, D)     VMEM  running weighted sum of x    (f32 scratch)
    """
    k = pl.program_id(1)

    @pl.when(k == 0)
    def _():
        m_sc[...] = jnp.full_like(m_sc, -jnp.inf)
        l_sc[...] = jnp.zeros_like(l_sc)
        acc_sc[...] = jnp.zeros_like(acc_sc)

    w = w_ref[...].astype(jnp.float32)  # (1, D)

    # Score projection on the VPU/XLU: scores[b, s] = sum_d x[b, s, d] * w[d].
    # keepdims keeps the per-(b, s) scalar on its own sublane row -> free broadcast
    # across the D lanes below. (The Linear bias is a softmax no-op and is omitted.)
    scores = jnp.sum(x_ref[...].astype(jnp.float32) * w,
                     axis=-1, keepdims=True)                  # (tb, ts, 1)

    # Online-softmax update across sequence blocks.
    m_prev = m_sc[...]                                        # (tb, 1)
    m_new = jnp.maximum(m_prev, jnp.max(scores, axis=1))      # (tb, 1)
    alpha = jnp.exp(m_prev - m_new)                           # (tb, 1)
    p = jnp.exp(scores - m_new[:, :, None])                   # (tb, ts, 1)

    l_sc[...] = alpha * l_sc[...] + jnp.sum(p, axis=1)        # (tb, 1)
    # Re-index x_ref for the context pass (bounded live range); the (tb, ts, 1) weight
    # broadcast across D lanes is free in this layout.
    acc_sc[...] = alpha * acc_sc[...] + jnp.sum(
        x_ref[...].astype(jnp.float32) * p, axis=1)           # (tb, D)
    m_sc[...] = m_new

    @pl.when(k == pl.num_programs(1) - 1)
    def _():
        # Exact divide: mem-bound kernel, so the extra EUP work is hidden; weights sum to 1.
        # NOTE: if D < 128 (demo D=64) this store is lane-masked; production D=2*hidden is
        # typically >= 128 and then the store is fully lane-dense.
        o_ref[...] = (acc_sc[...] / l_sc[...]).astype(o_ref.dtype)


def _largest_divisor_tile(n, cap, quantum=8):
    """Largest t <= cap with t % quantum == 0 and n % t == 0; None if none exists."""
    cap = min(cap, n)
    t = (cap // quantum) * quantum
    while t >= quantum:
        if n % t == 0:
            return t
        t -= quantum
    return None


def _choose_blocks(B, S, D, itemsize,
                   tiny_bytes=512 * 1024,
                   target_block_bytes=2 * 1024 * 1024):
    """Pick (tb, ts) so the (tb, ts, D) input block is ~target_block_bytes and, whenever
    the total input exceeds `tiny_bytes`, the grid has length >= 2 (DMA/compute overlap
    + work for both v7x TensorCores). tb/ts are multiples of 8 or full extents."""
    total = B * S * D * itemsize
    if total <= tiny_bytes:
        return B, S  # single grid step: pipelining overhead not worth it

    row_bytes = S * D * itemsize  # one batch element
    tb = None
    if row_bytes * 8 <= 2 * target_block_bytes:
        cap = max(8, min(target_block_bytes // row_bytes, B // 2) // 8 * 8)
        tb = _largest_divisor_tile(B, cap, 8)
    if tb is None:
        tb = 8 if (B % 8 == 0 and B >= 8) else B

    if tb * S * D * itemsize <= target_block_bytes and B // tb >= 2:
        return tb, S

    # Tile the sequence axis too (online-softmax reduction handles the rest).
    slab_bytes = tb * D * itemsize
    cap = max(8, (target_block_bytes // slab_bytes) // 8 * 8)
    if B // tb == 1:
        cap = min(cap, max(8, (S // 2) // 8 * 8))  # force grid >= 2 along S
    ts = _largest_divisor_tile(S, cap, 8)
    if ts is None:
        ts = S
    return tb, ts


def attention_forward(lstm_output, attn_weight, attn_bias=None, *,
                      batch_block=None, seq_block=None, vmem_limit_bytes=None):
    """Pallas implementation of the Attention module's forward pass.

    lstm_output: (B, S, D) f32/bf16
    attn_weight: (1, D) or (D,)  (nn.Linear(D, 1).weight)
    attn_bias:   accepted for module parity; provably a softmax no-op, never read.
    returns:     (B, D) context vectors (same dtype as lstm_output)

    batch_block / seq_block: optional tile overrides (must divide B / S and be multiples
    of 8 or full extents). Defaults come from _choose_blocks (~2 MiB blocks, grid >= 2).
    """
    del attn_bias  # constant shift of all scores -> softmax-invariant
    B, S, D = lstm_output.shape
    attn_weight = attn_weight.reshape(1, D)

    tb_auto, ts_auto = _choose_blocks(B, S, D, lstm_output.dtype.itemsize)
    tb = batch_block if batch_block is not None else tb_auto
    ts = seq_block if seq_block is not None else ts_auto
    assert B % tb == 0 and (tb == B or tb % 8 == 0), "batch block must divide B (mult of 8 or B)"
    assert S % ts == 0 and (ts == S or ts % 8 == 0), "seq block must divide S (mult of 8 or S)"
    grid = (B // tb, S // ts)

    return pl.pallas_call(
        _attention_kernel,
        out_shape=jax.ShapeDtypeStruct((B, D), lstm_output.dtype),
        grid_spec=pltpu.PrefetchScalarGridSpec(
            num_scalar_prefetch=0,
            grid=grid,
            in_specs=[
                pl.BlockSpec((tb, ts, D), lambda i, k: (i, k, 0)),
                pl.BlockSpec((1, D), lambda i, k: (0, 0)),
            ],
            out_specs=pl.BlockSpec((tb, D), lambda i, k: (i, 0)),
            scratch_shapes=[
                pltpu.VMEM((tb, 1), jnp.float32),   # running max
                pltpu.VMEM((tb, 1), jnp.float32),   # running denominator
                pltpu.VMEM((tb, D), jnp.float32),   # running context accumulator
            ],
        ),
        compiler_params=pltpu.CompilerParams(
            dimension_semantics=("parallel", "arbitrary"),
            vmem_limit_bytes=vmem_limit_bytes,
        ),
    )(lstm_output, attn_weight)


def attention_reference(lstm_output, attn_weight, attn_bias):
    """Pure-JAX reference mirroring the PyTorch module (bias included)."""
    scores = jnp.einsum("bsd,od->bso", lstm_output, attn_weight) + attn_bias[0, 0]
    scores = scores[..., 0]                                   # squeeze(-1) -> (B, S)
    weights = jax.nn.softmax(scores, axis=1)                  # softmax over seq
    context = jnp.sum(lstm_output * weights[..., None], axis=1)
    return context


if __name__ == "__main__":
    # Small shapes implied by the module: batch=2, seq=8, hidden=32 -> D = 2*hidden = 64
    B, S, hidden = 2, 8, 32
    D = 2 * hidden

    key = jax.random.PRNGKey(0)
    k_x, k_w, k_b, k_x2 = jax.random.split(key, 4)

    lstm_output = jax.random.normal(k_x, (B, S, D), dtype=jnp.float32)
    bound = 1.0 / jnp.sqrt(jnp.float32(D))
    attn_weight = jax.random.uniform(k_w, (1, D), jnp.float32, -bound, bound)
    attn_bias = jax.random.uniform(k_b, (1, 1), jnp.float32, -bound, bound)

    out = attention_forward(lstm_output, attn_weight, attn_bias)
    out = jax.block_until_ready(out)
    ref = attention_reference(lstm_output, attn_weight, attn_bias)
    assert out.shape == (B, D)
    assert jnp.allclose(out, ref, atol=1e-4, rtol=1e-4), "mismatch vs reference (demo shapes)"

    # Second check: exercise the pipelined/tiled path — multiple batch blocks on the
    # "parallel" axis and the online-softmax reduction across multiple seq blocks.
    B2, S2, D2 = 16, 512, 128
    x2 = jax.random.normal(k_x2, (B2, S2, D2), dtype=jnp.float32)
    w2 = jax.random.uniform(k_w, (1, D2), jnp.float32, -0.1, 0.1)
    zero_bias = jnp.zeros((1, 1), jnp.float32)
    out2 = attention_forward(x2, w2, zero_bias, batch_block=8, seq_block=128)
    out2 = jax.block_until_ready(out2)
    ref2 = attention_reference(x2, w2, zero_bias)
    assert jnp.allclose(out2, ref2, atol=1e-4, rtol=1e-4), "mismatch vs reference (tiled path)"

    print("KERNEL_OK")
</pallas_src>

<mosaic_0001>
module attributes {stable_mosaic.version = 11 : i64} {
  func.func @_attention_kernel(%arg0: i32, %arg1: i32, %arg2: memref<2x8x64xf32, #tpu.memory_space<vmem>>, %arg3: memref<1x64xf32, #tpu.memory_space<vmem>>, %arg4: memref<2x64xf32, #tpu.memory_space<vmem>>, %arg5: memref<2x1xf32, #tpu.memory_space<vmem>>, %arg6: memref<2x1xf32, #tpu.memory_space<vmem>>, %arg7: memref<2x64xf32, #tpu.memory_space<vmem>>) attributes {dimension_semantics = [#tpu.dimension_semantics<parallel>, #tpu.dimension_semantics<arbitrary>], iteration_bounds = array<i64: 1, 1>, scalar_prefetch = 0 : i64, scratch_operands = 3 : i64, tpu.core_type = #tpu.core_type<tc>, window_params = [{transform_indices = @transform_0, window_bounds = array<i64: 2, 8, 64>}, {pipeline_mode = #tpu.pipeline_mode<synchronous>, transform_indices = @transform_1, window_bounds = array<i64: 1, 64>}, {transform_indices = @transform_2, window_bounds = array<i64: 2, 64>}]} {
    %c0_i32 = arith.constant 0 : i32
    %0 = arith.cmpi eq, %arg1, %c0_i32 : i32
    %1 = arith.extui %0 : i1 to i32
    %c0_i32_0 = arith.constant 0 : i32
    %2 = arith.cmpi ne, %1, %c0_i32_0 : i32
    scf.if %2 {
      %cst_25 = arith.constant 0xFF800000 : f32
      %37 = vector.broadcast %cst_25 : f32 to vector<2x1xf32>
      %c0_26 = arith.constant 0 : index
      %c0_27 = arith.constant 0 : index
      %38 = vector.load %arg5[%c0_26, %c0_27] : memref<2x1xf32, #tpu.memory_space<vmem>>, vector<2x1xf32>
      tpu.vector_store %arg5[%c0_26, %c0_27], %37 {strides = array<i32>} : memref<2x1xf32, #tpu.memory_space<vmem>>, vector<2x1xf32>,
      %cst_28 = arith.constant 0.000000e+00 : f32
      %39 = vector.broadcast %cst_28 : f32 to vector<2x1xf32>
      %c0_29 = arith.constant 0 : index
      %c0_30 = arith.constant 0 : index
      %40 = vector.load %arg6[%c0_29, %c0_30] : memref<2x1xf32, #tpu.memory_space<vmem>>, vector<2x1xf32>
      tpu.vector_store %arg6[%c0_29, %c0_30], %39 {strides = array<i32>} : memref<2x1xf32, #tpu.memory_space<vmem>>, vector<2x1xf32>,
      %cst_31 = arith.constant 0.000000e+00 : f32
      %41 = vector.broadcast %cst_31 : f32 to vector<2x64xf32>
      %c0_32 = arith.constant 0 : index
      %c0_33 = arith.constant 0 : index
      %42 = vector.load %arg7[%c0_32, %c0_33] : memref<2x64xf32, #tpu.memory_space<vmem>>, vector<2x64xf32>
      tpu.vector_store %arg7[%c0_32, %c0_33], %41 {strides = array<i32>} : memref<2x64xf32, #tpu.memory_space<vmem>>, vector<2x64xf32>,
    } else {
    }
    %c0 = arith.constant 0 : index
    %c0_1 = arith.constant 0 : index
    %3 = vector.load %arg3[%c0, %c0_1] : memref<1x64xf32, #tpu.memory_space<vmem>>, vector<1x64xf32>
    %c0_2 = arith.constant 0 : index
    %c0_3 = arith.constant 0 : index
    %c0_4 = arith.constant 0 : index
    %4 = vector.load %arg2[%c0_2, %c0_3, %c0_4] : memref<2x8x64xf32, #tpu.memory_space<vmem>>, vector<2x8x64xf32>
    %5 = vector.shape_cast %3 : vector<1x64xf32> to vector<1x1x64xf32>
    %6 = vector.broadcast %5 : vector<1x1x64xf32> to vector<2x8x64xf32>
    %7 = arith.mulf %4, %6 : vector<2x8x64xf32>
    %cst = arith.constant dense<0.000000e+00> : vector<2x8xf32>
    %8 = vector.multi_reduction <add>, %7, %cst [2] : vector<2x8x64xf32> to vector<2x8xf32>
    %9 = vector.shape_cast %8 : vector<2x8xf32> to vector<2x8x1xf32>
    %c0_5 = arith.constant 0 : index
    %c0_6 = arith.constant 0 : index
    %10 = vector.load %arg5[%c0_5, %c0_6] : memref<2x1xf32, #tpu.memory_space<vmem>>, vector<2x1xf32>
    %cst_7 = arith.constant dense<0xFF800000> : vector<2x1xf32>
    %11 = vector.multi_reduction <maximumf>, %9, %cst_7 [1] : vector<2x8x1xf32> to vector<2x1xf32>
    %12 = arith.maximumf %10, %11 : vector<2x1xf32>
    %13 = arith.subf %10, %12 : vector<2x1xf32>
    %14 = math.exp %13 : vector<2x1xf32>
    %15 = vector.shape_cast %12 : vector<2x1xf32> to vector<2x1x1xf32>
    %16 = vector.broadcast %15 : vector<2x1x1xf32> to vector<2x8x1xf32>
    %17 = arith.subf %9, %16 : vector<2x8x1xf32>
    %18 = math.exp %17 : vector<2x8x1xf32>
    %c0_8 = arith.constant 0 : index
    %c0_9 = arith.constant 0 : index
    %19 = vector.load %arg6[%c0_8, %c0_9] : memref<2x1xf32, #tpu.memory_space<vmem>>, vector<2x1xf32>
    %20 = arith.mulf %14, %19 : vector<2x1xf32>
    %cst_10 = arith.constant dense<0.000000e+00> : vector<2x1xf32>
    %21 = vector.multi_reduction <add>, %18, %cst_10 [1] : vector<2x8x1xf32> to vector<2x1xf32>
    %22 = arith.addf %20, %21 : vector<2x1xf32>
    %c0_11 = arith.constant 0 : index
    %c0_12 = arith.constant 0 : index
    %23 = vector.load %arg6[%c0_11, %c0_12] : memref<2x1xf32, #tpu.memory_space<vmem>>, vector<2x1xf32>
    tpu.vector_store %arg6[%c0_11, %c0_12], %22 {strides = array<i32>} : memref<2x1xf32, #tpu.memory_space<vmem>>, vector<2x1xf32>,
    %c0_13 = arith.constant 0 : index
    %c0_14 = arith.constant 0 : index
    %24 = vector.load %arg7[%c0_13, %c0_14] : memref<2x64xf32, #tpu.memory_space<vmem>>, vector<2x64xf32>
    %25 = vector.broadcast %14 : vector<2x1xf32> to vector<2x64xf32>
    %26 = arith.mulf %25, %24 : vector<2x64xf32>
    %c0_15 = arith.constant 0 : index
    %c0_16 = arith.constant 0 : index
    %c0_17 = arith.constant 0 : index
    %27 = vector.load %arg2[%c0_15, %c0_16, %c0_17] : memref<2x8x64xf32, #tpu.memory_space<vmem>>, vector<2x8x64xf32>
    %28 = vector.broadcast %18 : vector<2x8x1xf32> to vector<2x8x64xf32>
    %29 = arith.mulf %27, %28 : vector<2x8x64xf32>
    %cst_18 = arith.constant dense<0.000000e+00> : vector<2x64xf32>
    %30 = vector.multi_reduction <add>, %29, %cst_18 [1] : vector<2x8x64xf32> to vector<2x64xf32>
    %31 = arith.addf %26, %30 : vector<2x64xf32>
    %c0_19 = arith.constant 0 : index
    %c0_20 = arith.constant 0 : index
    %32 = vector.load %arg7[%c0_19, %c0_20] : memref<2x64xf32, #tpu.memory_space<vmem>>, vector<2x64xf32>
    tpu.vector_store %arg7[%c0_19, %c0_20], %31 {strides = array<i32>} : memref<2x64xf32, #tpu.memory_space<vmem>>, vector<2x64xf32>,
    %c0_21 = arith.constant 0 : index
    %c0_22 = arith.constant 0 : index
    %33 = vector.load %arg5[%c0_21, %c0_22] : memref<2x1xf32, #tpu.memory_space<vmem>>, vector<2x1xf32>
    tpu.vector_store %arg5[%c0_21, %c0_22], %12 {strides = array<i32>} : memref<2x1xf32, #tpu.memory_space<vmem>>, vector<2x1xf32>,
    %c0_i32_23 = arith.constant 0 : i32
    %34 = arith.cmpi eq, %arg1, %c0_i32_23 : i32
    %35 = arith.extui %34 : i1 to i32
    %c0_i32_24 = arith.constant 0 : i32
    %36 = arith.cmpi ne, %35, %c0_i32_24 : i32
    scf.if %36 {
      %c0_25 = arith.constant 0 : index
      %c0_26 = arith.constant 0 : index
      %37 = vector.load %arg7[%c0_25, %c0_26] : memref<2x64xf32, #tpu.memory_space<vmem>>, vector<2x64xf32>
      %c0_27 = arith.constant 0 : index
      %c0_28 = arith.constant 0 : index
      %38 = vector.load %arg6[%c0_27, %c0_28] : memref<2x1xf32, #tpu.memory_space<vmem>>, vector<2x1xf32>
      %39 = vector.broadcast %38 : vector<2x1xf32> to vector<2x64xf32>
      %40 = arith.divf %37, %39 : vector<2x64xf32>
      %c0_29 = arith.constant 0 : index
      %c0_30 = arith.constant 0 : index
      %41 = vector.load %arg4[%c0_29, %c0_30] : memref<2x64xf32, #tpu.memory_space<vmem>>, vector<2x64xf32>
      tpu.vector_store %arg4[%c0_29, %c0_30], %40 {strides = array<i32>} : memref<2x64xf32, #tpu.memory_space<vmem>>, vector<2x64xf32>,
    } else {
    }
    return
  }
  func.func @transform_0(%arg0: i32, %arg1: i32) -> (i32, i32, i32) {
    %c0_i32 = arith.constant 0 : i32
    %c0_i32_0 = arith.constant 0 : i32
    return %arg0, %arg1, %c0_i32 : i32, i32, i32
  }
  func.func @transform_1(%arg0: i32, %arg1: i32) -> (i32, i32) {
    %c0_i32 = arith.constant 0 : i32
    %c0_i32_0 = arith.constant 0 : i32
    %c0_i32_1 = arith.constant 0 : i32
    return %c0_i32, %c0_i32_0 : i32, i32
  }
  func.func @transform_2(%arg0: i32, %arg1: i32) -> (i32, i32) {
    %c0_i32 = arith.constant 0 : i32
    %c0_i32_0 = arith.constant 0 : i32
    return %arg0, %c0_i32 : i32, i32
  }
}

</mosaic_0001>

<bundles_post_ra>
// kernel: tpu_custom_call.1
= control target key start
LH: loop header
LB: loop body
LE: loop exit
PB: predicated region body
PF: predicated region fallthrough
CT: control target
= control target key end

     0   :  { %7 = vsyncpa [#allocation6], 0  ;;  %s348_s0 = inlined_call_operand.hbm [shape: f32[2,8,64], index: 0, kind: input, shape index: {}]   ;;  %s349_s1 = inlined_call_operand.vmem [shape: f32[1,64], index: 1, kind: input, shape index: {}]   ;;  %s350_s2 = inlined_call_operand.hbm [shape: f32[2,64], index: 2, kind: output, shape index: {}]  }
   0x1   :  { %8 = vsyncpa [#allocation7], 0  ;;  %s276_s9 = smov [#allocation5]   ;;  %s228_s13 = scalar_lea.hbm %s348_s0, 256 }
   0x2   :  { %s14_s10 = sshll.u32 %s276_s9, 4  ;;  %p229_p0 = scmp.ne.s32.totalorder %s348_s0, %s228_s13  ;;  %s15_s10 = int_to_ptr.vmem [resolvable:$true] %s14_s10 }
   0x3   :  { %p232_p1 = scmp.lt.u32.totalorder %s228_s13, %s348_s0 }
   0x5   :  { %p234_p2 = pnand %p232_p1, %p229_p0 }
   0x7   :  { %237 = shalt.err (!%p234_p2)
}
   0x8   :  { %s238_s18 = scalar_lea.vmem %s15_s10, 256  ;;  %p243_p4 = scmp.lt.s32.totalorder %s15_s10, %s15_s10 }
   0x9   :  { %p239_p3 = scmp.ne.s32.totalorder %s15_s10, %s238_s18  ;;  %p244_p5 = scmp.lt.s32.totalorder %s238_s18, %s238_s18 }
   0xb   :  { %p245_p6 = por %p244_p5, %p243_p4 }
   0xd   :  { %p246_p7 = pnand %p245_p6, %p239_p3 }
   0xf   :  { %249 = shalt.err (!%p246_p7)
}
  0x10   :  { %s277_s19 = smov 128   ;;  %s278_s20 = smov 8  }
  0x11   :  { %20 = dma.hbm_to_vmem [thread:$0]  %s348_s0, 256, %s15_s10, [#allocation6], %s277_s19, %s277_s19, %s278_s20  }
  0x12   :  { %272 = dma.done.wait [#allocation6], 256  }
  0x13   :  { %273 = vsyncadd [#allocation6], 4294967040  ;;  %v209_v0 = vld [vmem:[%s349_s1] ss:$0 sm:$0xff]  ;;  %v314_v1 = vld [vmem:[#allocation5] sm:$0xff]  ;;  %vm46_vm0 = vcmask 523264   ;;  %v79_v20 = vlaneseq }
  0x14   :  { %v316_v2 = vld [vmem:[#allocation5 + $0x8] sm:$0xff]  ;;  %v44_v3 = vmul.f32 %v209_v0, %v314_v1  ;;  %vm30_vm1 = vcmask 1024   ;;  %v279_v7 = vmov -inf   ;;  %v280_v8 = vmov 0.0   ;;  %s283_s0 = smov [#allocation8]  }
  0x15   :  { %v45_v4 = vmul.f32 %v209_v0, %v316_v2  ;;  %31 = vst.msk [vmem:[#allocation2] sm:$0x3] %vm30_vm1, %v279_v7  ;;  %32 = vst.msk [vmem:[#allocation3] sm:$0x3] %vm30_vm1, %v280_v8  ;;  %v281_v9 = vmov 0   ;;  %vm33_vm2 = vcmask 517120  }
  0x16   :  { %v47_v5 = vsel %vm46_vm0, %v44_v3, 0.0  ;;  %219 = vset.pattern.permute.xlu0 %v281_v9  ;;  %218 = vset.pattern.permute.xlu1 %v281_v9  ;;  %34 = vst.msk [vmem:[#allocation4] sm:$0x3] %vm33_vm2, %v280_v8  ;;  %v282_v18 = vmov 1966171168   ;;  %v80_v25 = vshrl.u32 %v79_v20, 7 }
  0x17   :  { %48 = vadd.xlane.f32.xlu0 %v47_v5  ;;  %v50_v6 = vsel %vm46_vm0, %v45_v4, 0.0  ;;  %v77_v19 = vunpack.c.l.s4 %v282_v18  ;;  %vm68_vm3 = vcmask 1041409   ;;  %vm116_vm4 = vcmask 7168   ;;  %s200_s1 = sshll.u32 %s283_s0, 4  ;;  %s201_s1 = int_to_ptr.vmem [resolvable:$true] %s200_s1 }
  0x18   :  { %v100_v33 = vsub.s32 0, %v80_v25  ;;  %s250_s25 = scalar_lea.vmem %s201_s1, 32  ;;  %p255_p9 = scmp.lt.s32.totalorder %s201_s1, %s201_s1 }
  0x19   :  { %v78_v24 = vunpack.c.0.s8 %v77_v19  ;;  %p251_p8 = scmp.ne.s32.totalorder %s201_s1, %s250_s25  ;;  %p256_p10 = scmp.lt.s32.totalorder %s250_s25, %s250_s25 }
  0x1b   :  { %51 = vadd.xlane.f32.xlu0 %v50_v6  ;;  %v81_v30 = vsub.s32 %v78_v24, %v80_v25  ;;  %p257_p11 = por %p256_p10, %p255_p9 }
  0x1c   :  { %v53_v28 = vld [vmem:[#allocation2] sm:$0x3]  ;;  %v114_v60 = vld [vmem:[#allocation3] sm:$0x3] }
  0x1d   :  { %p258_p12 = pnand %p257_p11, %p251_p8 }
  0xa4   :  { %v49_v10 = vpop.xlane.xlu0 %48 }
  0xa5   :  { %v54_v11 = vrot.slane %v49_v10, 4 }
  0xa7   :  { %v55_v12 = vmax.f32 %v49_v10, %v54_v11 }
  0xa8   :  { %v52_v13 = vpop.xlane.xlu0 %51 }
  0xa9   :  { %v56_v14 = vrot.slane %v55_v12, 2  ;;  %v60_v15 = vrot.slane %v52_v13, 4 }
  0xab   :  { %v57_v16 = vmax.f32 %v55_v12, %v56_v14  ;;  %v61_v17 = vmax.f32 %v52_v13, %v60_v15 }
  0xad   :  { %v62_v21 = vrot.slane %v61_v17, 2  ;;  %v58_v22 = vrot.slane %v57_v16, 1 }
  0xaf   :  { %v63_v23 = vmax.f32 %v61_v17, %v62_v21  ;;  %v59_v27 = vmax.f32 %v57_v16, %v58_v22  ;;  %v138_v21 = vld [vmem:[#allocation4] sm:$0x3] }
  0xb1   :  { %v64_v26 = vrot.slane %v63_v23, 1 }
  0xb3   :  { %v65_v29 = vmax.f32 %v63_v23, %v64_v26 }
  0xb5   :  { %v69_v31 = vsel %vm68_vm3, %v65_v29, %v59_v27 }
  0xb6   :  { %v71_v32 = vmax.f32 %v53_v28, %v69_v31 }
  0xb8   :  { %v72_v34 = vsub.f32 %v53_v28, %v71_v32  ;;  %v82_v35 = vrot.slane %v71_v32, %v81_v30  ;;  %180 = vst.msk [vmem:[#allocation2] sm:$0x3] %vm30_vm1, %v71_v32 }
  0xba   :  { %v73_v36 = vmul.f32 1.442695, %v72_v34  ;;  %v83_v37 = vcombine.high %v82_v35, %v82_v35  ;;  %v90_v38 = vrot.slane %v82_v35, %v81_v30 }
  0xbc   :  { %220 = vpow2.f32 %v73_v36  ;;  %v97_v39 = vrot.slane %v83_v37, %v81_v30  ;;  %v101_v40 = vrot.slane %v90_v38, %v100_v33 }
  0xbe   :  { %v105_v41 = vrot.slane %v97_v39, %v100_v33  ;;  %v108_v42 = vsub.f32 %v49_v10, %v101_v40 }
  0xc0   :  { %v109_v43 = vsub.f32 %v52_v13, %v105_v41  ;;  %v110_v44 = vmul.f32 1.442695, %v108_v42 }
  0xc2   :  { %v112_v45 = vmul.f32 1.442695, %v109_v43  ;;  %222 = vpow2.f32 %v110_v44 }
  0xc4   :  { %224 = vpow2.f32 %v112_v45 }
  0xc6   :  { %v221_v46 = vpop.eup %220 }
  0xc7   :  { %141 = vperm.xlu0 %219, %v221_v46   ;;  %v115_v0 = vmul.f32 %v221_v46, %v114_v60 }
  0xcc   :  { %v223_v47 = vpop.eup %222 }
  0xcd   :  { %149 = vperm.xlu1 %218, %v223_v47   ;;  %v117_v48 = vsel %vm116_vm4, %v223_v47, 0.0 }
  0xce   :  { %v225_v49 = vpop.eup %224  ;;  %v118_v50 = vrot.slane %v117_v48, 4 }
  0xcf   :  { %v124_v51 = vsel %vm116_vm4, %v225_v49, 0.0 }
  0xd0   :  { %v125_v52 = vrot.slane %v124_v51, 4  ;;  %v119_v53 = vadd.f32 %v118_v50, %v117_v48 }
  0xd1   :  { %154 = vperm.xlu1 %218, %v225_v49  }
  0xd2   :  { %v126_v54 = vadd.f32 %v125_v52, %v124_v51  ;;  %v120_v55 = vrot.slane %v119_v53, 2 }
  0xd4   :  { %v127_v56 = vrot.slane %v126_v54, 2  ;;  %v121_v57 = vadd.f32 %v120_v55, %v119_v53 }
  0xd6   :  { %v128_v58 = vadd.f32 %v127_v56, %v126_v54  ;;  %v122_v59 = vrot.slane %v121_v57, 1 }
  0xd8   :  { %v129_v61 = vrot.slane %v128_v58, 1  ;;  %v123_v63 = vadd.f32 %v122_v59, %v121_v57 }
  0xda   :  { %v130_v62 = vadd.f32 %v129_v61, %v128_v58 }
  0xdc   :  { %v133_v3 = vsel %vm68_vm3, %v130_v62, %v123_v63 }
  0xdd   :  { %v135_v4 = vadd.f32 %v133_v3, %v115_v0 }
  0xdf   :  { %137 = vst.msk [vmem:[#allocation3] sm:$0x3] %vm30_vm1, %v135_v4 }
  0xe6   :  { %v185_v5 = vld [vmem:[#allocation3] sm:$0x3] }
  0xe7   :  { %188 = vperm.xlu1 %218, %v185_v5  }
 0x146   :  { %v142_v22 = vpop.permute.xlu0 %141 }
 0x147   :  { %v144_v25 = vmul.f32 %v142_v22, %v138_v21 }
 0x14c   :  { %v150_v6 = vpop.permute.xlu1 %149 }
 0x14d   :  { %v157_v7 = vmul.f32 %v150_v6, %v314_v1 }
 0x14f   :  { %v159_v8 = vsel %vm46_vm0, %v157_v7, 0.0 }
 0x150   :  { %v160_v9 = vrot.slane %v159_v8, 4  ;;  %v155_v10 = vpop.permute.xlu1 %154 }
 0x151   :  { %v158_v11 = vmul.f32 %v155_v10, %v316_v2 }
 0x152   :  { %v161_v12 = vadd.f32 %v160_v9, %v159_v8 }
 0x153   :  { %v166_v13 = vsel %vm46_vm0, %v158_v11, 0.0 }
 0x154   :  { %v162_v14 = vrot.slane %v161_v12, 2  ;;  %v167_v15 = vrot.slane %v166_v13, 4 }
 0x156   :  { %v163_v16 = vadd.f32 %v162_v14, %v161_v12  ;;  %v168_v17 = vadd.f32 %v167_v15, %v166_v13 }
 0x158   :  { %v169_v18 = vrot.slane %v168_v17, 2  ;;  %v164_v19 = vrot.slane %v163_v16, 1 }
 0x15a   :  { %v170_v20 = vadd.f32 %v169_v18, %v168_v17  ;;  %v165_v1 = vadd.f32 %v164_v19, %v163_v16 }
 0x15c   :  { %v171_v23 = vrot.slane %v170_v20, 1 }
 0x15e   :  { %v172_v24 = vadd.f32 %v171_v23, %v170_v20 }
 0x160   :  { %v175_v26 = vsel %vm68_vm3, %v172_v24, %v165_v1 }
 0x161   :  { %v177_v27 = vadd.f32 %v175_v26, %v144_v25 }
 0x163   :  { %179 = vst.msk [vmem:[#allocation4] sm:$0x3] %vm33_vm2, %v177_v27 }
 0x166   :  { %v189_v2 = vpop.permute.xlu1 %188 }
 0x167   :  { %226 = vrcp.f32 %v189_v2 }
 0x16a   :  { %v184_v29 = vld [vmem:[#allocation4] sm:$0x3] }
 0x171   :  { %v227_v28 = vpop.eup %226 }
 0x172   :  { %v192_v30 = vmul.f32 %v227_v28, %v184_v29 }
 0x174   :  { %193 = vst.msk [vmem:[#allocation8] sm:$0x3] %vm33_vm2, %v192_v30 }
 0x175   :  { %261 = shalt.err (!%p258_p12)
}
 0x176   :  { %s262_s28 = scalar_lea.hbm %s350_s2, 32 }
 0x177   :  { %p263_p13 = scmp.ne.s32.totalorder %s350_s2, %s262_s28  ;;  %p266_p0 = scmp.lt.u32.totalorder %s262_s28, %s350_s2 }
 0x179   :  { %p268_p1 = pnand %p266_p0, %p263_p13 }
 0x17b   :  { %271 = shalt.err (!%p268_p1)
}
 0x17c   :  { %203 = dma.vmem_to_hbm [thread:$0]  %s201_s1, 32, %s350_s2, [#allocation7]  }
 0x17d   :  { %274 = dma.done.wait [#allocation7], 32  }
 0x17e   :  { %275 = vsyncadd [#allocation7], 4294967264 }
 0x17f   :  { %207 = vsyncpa [#allocation6], 1 }
 0x180   :  { %208 = vsyncpa [#allocation7], 1 }

</bundles_post_ra>
